<compile_context>
chip_gen: v7x
topology: tpu7x:2x2x1
jax: 0.10.0
libtpu: 0.0.40
codegen_flags: <defaults>
</compile_context>

<pallas_src>
import math

import jax
import jax.numpy as jnp
from jax import lax
from jax.experimental import pallas as pl
from jax.experimental.pallas import tpu as pltpu


def _round_up(x, m):
    return (x + m - 1) // m * m


def _pick_tile_m(M, max_tile):
    """Largest row tile (multiple of 8, <= max_tile) with <= ~12.5% M padding waste."""
    M8 = _round_up(M, 8)
    max_tile = max(8, (max_tile // 8) * 8)
    if M8 <= max_tile:
        return M8
    t = max_tile
    while t > 8:
        if (_round_up(M, t) - M) * 8 <= M:          # waste <= M/8
            return t
        t = max(8, (t // 2 // 8) * 8)
    return 8


def _make_fusion_kernel(tn, tk, num_k, resident_w):
    """Build the kernel for one (tm, tn) output tile of tanh(x @ W^T + b)."""
    single_k = num_k == 1

    def _w_tile(w_ref):
        if not resident_w:
            return w_ref[...]                        # streamed (tn, tk) block
        # Resident layout (num_k, N_pad, tk): integer index on the leading
        # K-block axis + pl.ds on the sublane (N) axis only — never a dynamic
        # lane-dimension slice.
        j = pl.program_id(1)
        js = pl.multiple_of(j * tn, tn)
        k = 0 if single_k else pl.program_id(2)
        return w_ref[k, pl.ds(js, tn), :]            # (tn, tk)

    def _tile_dot(x_ref, w_ref):
        # x (tm, tk) contracted against W (tn, tk) on its last (in) dim:
        # A·Bᵀ is a native MXU pattern, no wrapper-side weight transpose.
        return lax.dot_general(
            x_ref[...], _w_tile(w_ref),
            dimension_numbers=(((1,), (1,)), ((), ())),
            preferred_element_type=jnp.float32)

    if single_k:
        # Single K step: no accumulator scratch, write the result once.
        def kernel(x_ref, w_ref, b_ref, o_ref):
            y = _tile_dot(x_ref, w_ref) + b_ref[...].astype(jnp.float32)
            o_ref[...] = jnp.tanh(y).astype(o_ref.dtype)
    else:
        def kernel(x_ref, w_ref, b_ref, o_ref, acc_ref):
            k = pl.program_id(2)

            @pl.when(k == 0)
            def _():
                acc_ref[...] = jnp.zeros_like(acc_ref)

            acc_ref[...] += _tile_dot(x_ref, w_ref)

            @pl.when(k == num_k - 1)
            def _():
                y = acc_ref[...] + b_ref[...].astype(jnp.float32)
                o_ref[...] = jnp.tanh(y).astype(o_ref.dtype)

    return kernel


def fusion_forward(hidden_states, weight, bias, *,
                   tile_m=512, tile_n=512, tile_k=512,
                   compute_dtype=jnp.bfloat16,
                   allow_resident_w=True,
                   vmem_cap_bytes=48 * 1024 * 1024):
    """Fusion forward: tanh(dropout(x) @ W^T + b), eval-mode dropout (identity).

    hidden_states: [B, S, H]
    weight:        [H, H]   PyTorch nn.Linear layout [out_features, in_features]
    bias:          [H]
    compute_dtype: matmul input dtype (default bf16); accumulation is f32.
    """
    B, S, H = hidden_states.shape
    M = B * S
    out_dtype = hidden_states.dtype

    cdt = jnp.dtype(compute_dtype) if compute_dtype is not None else jnp.dtype(out_dtype)
    x2d = hidden_states.reshape(M, H).astype(cdt)
    w2d = weight.astype(cdt)              # do once at weight-load time in real use
    b1d = bias.astype(jnp.float32)

    in_bytes = cdt.itemsize
    out_bytes = jnp.dtype(out_dtype).itemsize

    # ---- tile selection (lane-dense, tile-divisible padded dims) -----------
    H128 = _round_up(H, 128)
    tn = min(_round_up(tile_n, 128), H128)
    tk = min(_round_up(tile_k, 128), H128)
    tm = _pick_tile_m(M, tile_m)
    M_pad = _round_up(M, tm)
    N_pad = _round_up(H, tn)               # multiple of tn (and of 128)
    # Small-M (decode-like): split N so grid[0]*grid[1] >= 2 and both v7x
    # TensorCores get work.
    if M_pad // tm == 1 and N_pad // tn == 1 and N_pad > 128:
        tn = max(128, _round_up(tn // 2, 128))
        N_pad = _round_up(H, tn)
    K_pad = _round_up(H, tk)               # multiple of tk (and of 128)
    num_k = K_pad // tk
    single_k = num_k == 1

    # ---- VMEM budget & resident-W decision ----------------------------------
    # 2x everywhere: Pallas double-buffers pipelined blocks by default.
    tiles_bytes = (2 * tm * tk * in_bytes                 # x tile
                   + 2 * tm * tn * out_bytes              # output tile
                   + 2 * tn * 4                           # bias tile (f32)
                   + (0 if single_k else tm * tn * 4))    # f32 accumulator
    streamed_bytes = tiles_bytes + 2 * tn * tk * in_bytes
    resident_bytes = tiles_bytes + 2 * N_pad * K_pad * in_bytes
    headroom = 4 * 1024 * 1024
    if streamed_bytes + headroom > vmem_cap_bytes:
        raise ValueError(
            f"Tiles (tm={tm}, tn={tn}, tk={tk}) need "
            f"{streamed_bytes / 2**20:.1f} MiB VMEM, above the "
            f"{vmem_cap_bytes / 2**20:.0f} MiB cap; use smaller tiles.")
    resident_w = bool(allow_resident_w
                      and resident_bytes + headroom <= vmem_cap_bytes)
    vmem_need = resident_bytes if resident_w else streamed_bytes
    vmem_limit = int(min(max(vmem_need + headroom, 16 * 1024 * 1024),
                         vmem_cap_bytes))

    # ---- pad to the tiled problem (N and K padded independently) -----------
    if (M_pad, K_pad) != (M, H):
        x2d = jnp.pad(x2d, ((0, M_pad - M), (0, K_pad - H)))
    if (N_pad, K_pad) != (H, H):
        w2d = jnp.pad(w2d, ((0, N_pad - H), (0, K_pad - H)))
    if N_pad != H:
        b1d = jnp.pad(b1d, (0, N_pad - H))
    b2d = b1d.reshape(1, N_pad)

    if resident_w:
        # K-major block layout so the kernel never needs a dynamic lane slice;
        # constant index_map -> W is DMA'd from HBM exactly once per call.
        w_in = w2d.reshape(N_pad, num_k, tk).transpose(1, 0, 2)
        w_spec = pl.BlockSpec((num_k, N_pad, tk), lambda i, j, k: (0, 0, 0))
    else:
        w_in = w2d
        w_spec = pl.BlockSpec((tn, tk), lambda i, j, k: (j, k))

    grid = (M_pad // tm, N_pad // tn, num_k)

    w_hbm_bytes = (N_pad * K_pad * in_bytes if resident_w
                   else grid[0] * N_pad * K_pad * in_bytes)
    cost = pl.CostEstimate(
        flops=2 * M_pad * N_pad * K_pad,
        transcendentals=M_pad * N_pad,
        bytes_accessed=(M_pad * K_pad * in_bytes + w_hbm_bytes
                        + N_pad * 4 + M_pad * N_pad * out_bytes))

    kernel = _make_fusion_kernel(tn, tk, num_k, resident_w)
    scratch = [] if single_k else [pltpu.VMEM((tm, tn), jnp.float32)]

    out2d = pl.pallas_call(
        kernel,
        out_shape=jax.ShapeDtypeStruct((M_pad, N_pad), out_dtype),
        grid_spec=pltpu.PrefetchScalarGridSpec(
            num_scalar_prefetch=0,
            grid=grid,
            in_specs=[
                pl.BlockSpec((tm, tk), lambda i, j, k: (i, k)),   # x tile
                w_spec,                                           # weight
                pl.BlockSpec((1, tn), lambda i, j, k: (0, j)),    # bias row
            ],
            out_specs=pl.BlockSpec((tm, tn), lambda i, j, k: (i, j)),
            scratch_shapes=scratch,
        ),
        compiler_params=pltpu.CompilerParams(
            dimension_semantics=("parallel", "parallel", "arbitrary"),
            vmem_limit_bytes=vmem_limit,
        ),
        cost_estimate=cost,
    )(x2d, w_in, b2d)

    return out2d[:M, :H].reshape(B, S, H)


if __name__ == "__main__":
    # Small shapes consistent with the module: batch=2, seq=8, hidden=32.
    B, S, H = 2, 8, 32
    dropout_prob = 0.1  # identity at inference

    key = jax.random.PRNGKey(0)
    k_x, k_w, k_b = jax.random.split(key, 3)

    hidden_states = jax.random.normal(k_x, (B, S, H), dtype=jnp.float32)
    bound = 1.0 / math.sqrt(H)
    weight = jax.random.uniform(k_w, (H, H), minval=-bound, maxval=bound,
                                dtype=jnp.float32)
    bias = jax.random.uniform(k_b, (H,), minval=-bound, maxval=bound,
                              dtype=jnp.float32)

    ref = jnp.tanh(jnp.matmul(hidden_states, weight.T,
                              precision=lax.Precision.HIGHEST) + bias)

    # 1) Default path: bf16 compute, resident W, single-K fast path.
    out_bf16 = jax.block_until_ready(fusion_forward(hidden_states, weight, bias))
    assert out_bf16.shape == (B, S, H)
    assert jnp.allclose(out_bf16, ref, atol=3e-2, rtol=3e-2), "bf16 path mismatch"

    # 2) f32 compute path (tighter check).
    out_f32 = jax.block_until_ready(
        fusion_forward(hidden_states, weight, bias, compute_dtype=jnp.float32))
    assert jnp.allclose(out_f32, ref, atol=5e-3, rtol=5e-3), "f32 path mismatch"

    # 3) Ragged H (regression test for the H_pad-vs-tile divisibility bug):
    #    multi-K accumulator path, multi-column grid, resident W.
    H2 = 384
    x2 = jax.random.normal(k_x, (B, S, H2), dtype=jnp.float32)
    w2 = jax.random.uniform(k_w, (H2, H2), minval=-0.05, maxval=0.05,
                            dtype=jnp.float32)
    b2 = jax.random.uniform(k_b, (H2,), minval=-0.05, maxval=0.05,
                            dtype=jnp.float32)
    ref2 = jnp.tanh(jnp.matmul(x2, w2.T, precision=lax.Precision.HIGHEST) + b2)

    out2_res = jax.block_until_ready(
        fusion_forward(x2, w2, b2, compute_dtype=jnp.float32,
                       tile_n=256, tile_k=256))
    assert jnp.allclose(out2_res, ref2, atol=5e-3, rtol=5e-3), "resident-W mismatch"

    # 4) Same shape, streamed-W fallback path.
    out2_str = jax.block_until_ready(
        fusion_forward(x2, w2, b2, compute_dtype=jnp.float32,
                       tile_n=256, tile_k=256, allow_resident_w=False))
    assert jnp.allclose(out2_str, ref2, atol=5e-3, rtol=5e-3), "streamed-W mismatch"

    print("KERNEL_OK")
</pallas_src>

<mosaic_0001>
module attributes {stable_mosaic.version = 11 : i64} {
  func.func @kernel(%arg0: i32, %arg1: i32, %arg2: i32, %arg3: memref<16x128xbf16, #tpu.memory_space<vmem>>, %arg4: memref<1x128x128xbf16, #tpu.memory_space<vmem>>, %arg5: memref<1x128xf32, #tpu.memory_space<vmem>>, %arg6: memref<16x128xf32, #tpu.memory_space<vmem>>) attributes {dimension_semantics = [#tpu.dimension_semantics<parallel>, #tpu.dimension_semantics<parallel>, #tpu.dimension_semantics<arbitrary>], iteration_bounds = array<i64: 1, 1, 1>, scalar_prefetch = 0 : i64, scratch_operands = 0 : i64, tpu.core_type = #tpu.core_type<tc>, window_params = [{transform_indices = @transform_0, window_bounds = array<i64: 16, 128>}, {pipeline_mode = #tpu.pipeline_mode<synchronous>, transform_indices = @transform_1, window_bounds = array<i64: 1, 128, 128>}, {transform_indices = @transform_2, window_bounds = array<i64: 1, 128>}, {transform_indices = @transform_3, window_bounds = array<i64: 16, 128>}]} {
    %c0 = arith.constant 0 : index
    %c0_0 = arith.constant 0 : index
    %0 = vector.load %arg3[%c0, %c0_0] : memref<16x128xbf16, #tpu.memory_space<vmem>>, vector<16x128xbf16>
    %c128_i32 = arith.constant 128 : i32
    %1 = arith.muli %arg1, %c128_i32 : i32
    %2 = tpu.assume_multiple %1, 128 : i32
    %c0_1 = arith.constant 0 : index
    %3 = arith.index_cast %2 : i32 to index
    %c0_2 = arith.constant 0 : index
    %4 = vector.load %arg4[%c0_1, %3, %c0_2] : memref<1x128x128xbf16, #tpu.memory_space<vmem>>, vector<1x128x128xbf16>
    %5 = vector.shape_cast %4 : vector<1x128x128xbf16> to vector<128x128xbf16>
    %cst = arith.constant dense<0.000000e+00> : vector<16x128xf32>
    %6 = tpu.matmul %0, %5, %cst {dimension_numbers = #tpu.dot_dimension_numbers<[1], [1], [0], [0], [0, 0, 1, 0], [], []>} : vector<16x128xbf16>, vector<128x128xbf16>, vector<16x128xf32> -> vector<16x128xf32>
    %c0_3 = arith.constant 0 : index
    %c0_4 = arith.constant 0 : index
    %7 = vector.load %arg5[%c0_3, %c0_4] : memref<1x128xf32, #tpu.memory_space<vmem>>, vector<1x128xf32>
    %8 = vector.broadcast %7 : vector<1x128xf32> to vector<16x128xf32>
    %9 = arith.addf %6, %8 : vector<16x128xf32>
    %10 = math.tanh %9 : vector<16x128xf32>
    %c0_5 = arith.constant 0 : index
    %c0_6 = arith.constant 0 : index
    %11 = vector.load %arg6[%c0_5, %c0_6] : memref<16x128xf32, #tpu.memory_space<vmem>>, vector<16x128xf32>
    tpu.vector_store %arg6[%c0_5, %c0_6], %10 {strides = array<i32>} : memref<16x128xf32, #tpu.memory_space<vmem>>, vector<16x128xf32>,
    return
  }
  func.func @transform_0(%arg0: i32, %arg1: i32, %arg2: i32) -> (i32, i32) {
    %c0_i32 = arith.constant 0 : i32
    return %arg0, %arg2 : i32, i32
  }
  func.func @transform_1(%arg0: i32, %arg1: i32, %arg2: i32) -> (i32, i32, i32) {
    %c0_i32 = arith.constant 0 : i32
    %c0_i32_0 = arith.constant 0 : i32
    %c0_i32_1 = arith.constant 0 : i32
    %c0_i32_2 = arith.constant 0 : i32
    return %c0_i32, %c0_i32_0, %c0_i32_1 : i32, i32, i32
  }
  func.func @transform_2(%arg0: i32, %arg1: i32, %arg2: i32) -> (i32, i32) {
    %c0_i32 = arith.constant 0 : i32
    %c0_i32_0 = arith.constant 0 : i32
    return %c0_i32, %arg1 : i32, i32
  }
  func.func @transform_3(%arg0: i32, %arg1: i32, %arg2: i32) -> (i32, i32) {
    %c0_i32 = arith.constant 0 : i32
    return %arg0, %arg1 : i32, i32
  }
}

</mosaic_0001>

<bundles_post_ra>
// kernel: tpu_custom_call.1
= control target key start
LH: loop header
LB: loop body
LE: loop exit
PB: predicated region body
PF: predicated region fallthrough
CT: control target
= control target key end

     0   :  { %8 = vsyncpa [#allocation3], 0  ;;  %s394_s0 = inlined_call_operand.hbm [shape: bf16[16,128], index: 0, kind: input, shape index: {}]   ;;  %s395_s1 = inlined_call_operand.hbm [shape: bf16[1,128,128], index: 1, kind: input, shape index: {}]   ;;  %s396_s2 = inlined_call_operand.vmem [shape: f32[1,128], index: 2, kind: input, shape index: {}]   ;;  %s397_s3 = inlined_call_operand.hbm [shape: f32[16,128], index: 3, kind: output, shape index: {}]  }
   0x1   :  { %9 = vsyncpa [#allocation6], 0 }
   0x2   :  { %10 = vsyncpa [#allocation4], 0  ;;  %s326_s12 = smov [#allocation2]   ;;  %s254_s16 = scalar_lea.hbm %s394_s0, 128 }
   0x3   :  { %s16_s13 = sshll.u32 %s326_s12, 4  ;;  %p255_p0 = scmp.ne.s32.totalorder %s394_s0, %s254_s16  ;;  %s17_s13 = int_to_ptr.vmem [resolvable:$true] %s16_s13 }
   0x4   :  { %p258_p1 = scmp.lt.u32.totalorder %s254_s16, %s394_s0 }
   0x6   :  { %p260_p2 = pnand %p258_p1, %p255_p0 }
   0x8   :  { %263 = shalt.err (!%p260_p2)
}
   0x9   :  { %s264_s21 = scalar_lea.vmem %s17_s13, 128  ;;  %p269_p4 = scmp.lt.s32.totalorder %s17_s13, %s17_s13 }
   0xa   :  { %p265_p3 = scmp.ne.s32.totalorder %s17_s13, %s264_s21  ;;  %p270_p5 = scmp.lt.s32.totalorder %s264_s21, %s264_s21 }
   0xc   :  { %p271_p6 = por %p270_p5, %p269_p4 }
   0xe   :  { %p272_p7 = pnand %p271_p6, %p265_p3 }
  0x10   :  { %275 = shalt.err (!%p272_p7)
}
  0x11   :  { %s327_s22 = smov 64   ;;  %s328_s23 = smov 4  }
  0x12   :  { %22 = dma.hbm_to_vmem [thread:$0]  %s394_s0, 128, %s17_s13, [#allocation3], %s327_s22, %s327_s22, %s328_s23  }
  0x13   :  { %s329_s26 = smov [#allocation5]   ;;  %s276_s30 = scalar_lea.hbm %s395_s1, 1024 }
  0x14   :  { %s28_s27 = sshll.u32 %s329_s26, 4  ;;  %p277_p8 = scmp.ne.s32.totalorder %s395_s1, %s276_s30  ;;  %s29_s27 = int_to_ptr.vmem [resolvable:$true] %s28_s27 }
  0x15   :  { %p280_p9 = scmp.lt.u32.totalorder %s276_s30, %s395_s1 }
  0x17   :  { %p282_p10 = pnand %p280_p9, %p277_p8 }
  0x19   :  { %285 = shalt.err (!%p282_p10)
}
  0x1a   :  { %s286_s8 = scalar_lea.vmem %s29_s27, 1024  ;;  %p291_p12 = scmp.lt.s32.totalorder %s29_s27, %s29_s27 }
  0x1b   :  { %p287_p11 = scmp.ne.s32.totalorder %s29_s27, %s286_s8  ;;  %p292_p13 = scmp.lt.s32.totalorder %s286_s8, %s286_s8 }
  0x1d   :  { %p293_p0 = por %p292_p13, %p291_p12 }
  0x1f   :  { %p294_p1 = pnand %p293_p0, %p287_p11 }
  0x21   :  { %297 = shalt.err (!%p294_p1)
}
  0x22   :  { %34 = dma.hbm_to_vmem [thread:$0]  %s395_s1, 1024, %s29_s27, [#allocation6], %s327_s22, %s327_s22, %s328_s23  }
  0x23   :  { %320 = dma.done.wait [#allocation3], 128  }
  0x24   :  { %321 = vsyncadd [#allocation3], 4294967168 }
  0x25   :  { %322 = dma.done.wait [#allocation6], 1024  }
  0x26   :  { %323 = vsyncadd [#allocation6], 4294966272  ;;  %v330_v0 = vmov 0.0   ;;  %vm331_vm0 = vmmov 0   ;;  %v241_v1 = vld [vmem:[#allocation5] sm:$0xff]   ;;  %v242_v2 = vld [vmem:[#allocation5 + $0x8] sm:$0xff]  }
  0x27   :  { %212 = vmatprep.subr.bf16.mxu0 %v330_v0  ;;  %228 = vmatprep.mubr.msk.bf16.mxu0 %vm331_vm0, %v330_v0  ;;  %v243_v3 = vld [vmem:[#allocation5 + $0x10] sm:$0xff]   ;;  %v244_v4 = vld [vmem:[#allocation5 + $0x18] sm:$0xff]   ;;  %v245_v5 = vld [vmem:[#allocation5 + $0x20] sm:$0xff]   ;;  %s332_s11 = smov [#allocation7]  }
  0x28   :  { %213 = vmatpush3.bf16.xpose.msra.mxu0 %v241_v1  ;;  %v246_v6 = vld [vmem:[#allocation5 + $0x28] sm:$0xff]   ;;  %v247_v7 = vld [vmem:[#allocation5 + $0x30] sm:$0xff]   ;;  %v248_v8 = vld [vmem:[#allocation5 + $0x38] sm:$0xff]   ;;  %s178_s12 = sshll.u32 %s332_s11, 4  ;;  %s179_s12 = int_to_ptr.vmem [resolvable:$true] %s178_s12 }
  0x29   :  { %214 = vmatprep.subr.bf16.mxu0 %v330_v0  ;;  %v249_v9 = vld [vmem:[#allocation2] sm:$0xff]   ;;  %s298_s13 = scalar_lea.vmem %s179_s12, 256  ;;  %p303_p3 = scmp.lt.s32.totalorder %s179_s12, %s179_s12 }
  0x2a   :  { %v193_v10 = vld [vmem:[%s396_s2] ss:$0 sm:$0xff]  ;;  %p299_p2 = scmp.ne.s32.totalorder %s179_s12, %s298_s13  ;;  %p304_p4 = scmp.lt.s32.totalorder %s298_s13, %s298_s13 }
  0x2c   :  { %p305_p5 = por %p304_p4, %p303_p3 }
  0x2e   :  { %p306_p6 = pnand %p305_p5, %p299_p2 }
  0x30   :  { %215 = vmatpush3.bf16.xpose.msra.mxu0 %v242_v2 }
  0x31   :  { %216 = vmatprep.subr.bf16.mxu0 %v330_v0 }
  0x38   :  { %217 = vmatpush3.bf16.xpose.msra.mxu0 %v243_v3 }
  0x39   :  { %218 = vmatprep.subr.bf16.mxu0 %v330_v0 }
  0x40   :  { %219 = vmatpush3.bf16.xpose.msra.mxu0 %v244_v4 }
  0x41   :  { %220 = vmatprep.subr.bf16.mxu0 %v330_v0 }
  0x48   :  { %221 = vmatpush3.bf16.xpose.msra.mxu0 %v245_v5 }
  0x49   :  { %222 = vmatprep.subr.bf16.mxu0 %v330_v0 }
  0x50   :  { %223 = vmatpush3.bf16.xpose.msra.mxu0 %v246_v6 }
  0x51   :  { %224 = vmatprep.subr.bf16.mxu0 %v330_v0 }
  0x58   :  { %225 = vmatpush3.bf16.xpose.msra.mxu0 %v247_v7 }
  0x59   :  { %226 = vmatprep.subr.bf16.mxu0 %v330_v0 }
  0x60   :  { %227 = vmatpush3.bf16.xpose.msra.mxu0 %v248_v8 }
  0x67   :  { %229 = vmatmul.mubr.bf16.vlgmr.msra.gmra.mrb[0].mxu0 %v249_v9 }
 0x13a   :  { %v162_v11 = vpop.f32.mrb[0].mxu0 }
 0x13b   :  { %v163_v12 = vadd.f32 %v193_v10, %v162_v11  ;;  %v230_v13 = vpop.f32.mrb[1].mxu0 }
 0x13c   :  { %v165_v14 = vpop.f32.mrb[2].mxu0 }
 0x13d   :  { %250 = vtanh.f32 %v163_v12  ;;  %v166_v15 = vadd.f32 %v193_v10, %v165_v14  ;;  %v231_v16 = vpop.f32.mrb[3].mxu0 }
 0x13f   :  { %252 = vtanh.f32 %v166_v15 }
 0x147   :  { %v251_v17 = vpop.eup %250 }
 0x148   :  { %171 = vst [vmem:[#allocation7] sm:$0xff] %v251_v17 }
 0x149   :  { %v253_v18 = vpop.eup %252 }
 0x14a   :  { %172 = vst [vmem:[#allocation7 + $0x8] sm:$0xff] %v253_v18 }
 0x14b   :  { %309 = shalt.err (!%p306_p6)
}
 0x14c   :  { %s310_s15 = scalar_lea.hbm %s397_s3, 256 }
 0x14d   :  { %p311_p7 = scmp.ne.s32.totalorder %s397_s3, %s310_s15  ;;  %p314_p8 = scmp.lt.u32.totalorder %s310_s15, %s397_s3 }
 0x14f   :  { %p316_p9 = pnand %p314_p8, %p311_p7 }
 0x151   :  { %319 = shalt.err (!%p316_p9)
}
 0x152   :  { %s333_s20 = smov 128   ;;  %s334_s21 = smov 8  }
 0x153   :  { %184 = dma.vmem_to_hbm [thread:$0]  %s179_s12, 256, %s397_s3, [#allocation4], %s333_s20, %s333_s20, %s334_s21  }
 0x154   :  { %324 = dma.done.wait [#allocation4], 256  }
 0x155   :  { %325 = vsyncadd [#allocation4], 4294967040 }
 0x156   :  { %188 = vsyncpa [#allocation3], 1 }
 0x157   :  { %189 = vsyncpa [#allocation6], 1 }
 0x158   :  { %190 = vsyncpa [#allocation4], 1 }

</bundles_post_ra>
